<compile_context>
chip_gen: v6e
topology: v6e:2x2x1
jax: 0.10.0
libtpu: 0.0.40
codegen_flags: <defaults>
</compile_context>

<pallas_src>
import jax
import jax.numpy as jnp
from jax.experimental import pallas as pl
from jax.experimental.pallas import tpu as pltpu

_LANE = 128
_SMALL_BYTES = 1 << 20  # below this, plain XLA indexing beats a kernel launch


def _vmem_budget_and_limit():
    """Per-generation budget for the 4 pipeline buffers + scoped VMEM limit."""
    try:
        cap = int(pltpu.get_tpu_info().vmem_capacity_bytes)
    except Exception:  # query unavailable -> assume the smallest (v7x, 64 MiB)
        cap = 64 << 20
    budget = min(cap // 2, 48 << 20)           # 2 in + 2 out buffers live here
    limit = int(min(cap, budget + (16 << 20)))  # headroom over the footprint
    return budget, limit


def _copy_kernel(perm_ref, x_ref, o_ref):
    # The channel gather happens in the input BlockSpec index_map (which reads
    # the scalar-prefetched permutation); the body is a pure VMEM copy.
    del perm_ref
    o_ref[...] = x_ref[...]


def _channel_permute_pallas(x, perm):
    N, C, H, W = x.shape
    HW = H * W
    itemsize = jnp.dtype(x.dtype).itemsize

    budget, vmem_limit = _vmem_budget_and_limit()
    max_block_bytes = max(1, budget // 4)  # 2 in + 2 out double-buffers

    # Lane-dense layout: present spatial dims as (HW // 128, 128) so stores are
    # unmasked full-lane vst's. Contiguous NCHW -> free reshape. If HW isn't a
    # multiple of 128, flatten to a single trailing dim so only the final
    # partial 128-lane group is masked (instead of W-wide masked stores).
    if HW % _LANE == 0:
        rows, lanes = HW // _LANE, _LANE
    else:
        rows, lanes = 1, HW
    x_r = x.reshape(N, C, rows, lanes)

    # Rows tile: only needed when a single (1-batch, 1-channel) slab would
    # already exceed the per-block budget. Tile in multiples of the sublane
    # granularity (8 f32 rows, scaled up for packed sub-32-bit dtypes).
    slab_bytes = rows * lanes * itemsize
    if lanes != _LANE or slab_bytes <= max_block_bytes:
        tr = rows
    else:
        sub = 8 * max(1, 4 // itemsize)  # 8 (f32) / 16 (bf16) / 32 (int8)
        tr = (max_block_bytes // (lanes * itemsize)) // sub * sub
        tr = max(sub, min(tr, rows))

    # Batch tile: as large as fits the budget; cdiv + masked partial blocks so
    # awkward/prime N doesn't collapse to tn=1.
    block_bytes_per_n = tr * lanes * itemsize
    tn = int(max(1, min(N, max_block_bytes // block_bytes_per_n)))
    n_tiles = pl.cdiv(N, tn)
    r_tiles = pl.cdiv(rows, tr)

    def in_map(c, n, r, perm_ref):
        # Output channel c reads input channel perm[c].
        return (n, perm_ref[c], r, 0)

    def out_map(c, n, r, perm_ref):
        return (n, c, r, 0)

    grid_spec = pltpu.PrefetchScalarGridSpec(
        num_scalar_prefetch=1,
        # C leads so the v7x megacore split lands on an axis with >1 step.
        grid=(C, n_tiles, r_tiles),
        in_specs=[pl.BlockSpec((tn, 1, tr, lanes), in_map)],
        out_specs=pl.BlockSpec((tn, 1, tr, lanes), out_map),
    )

    out = pl.pallas_call(
        _copy_kernel,
        out_shape=jax.ShapeDtypeStruct((N, C, rows, lanes), x.dtype),
        grid_spec=grid_spec,
        compiler_params=pltpu.CompilerParams(
            # Pure gather-copy, no reduction axis: every axis is parallel.
            dimension_semantics=("parallel", "parallel", "parallel"),
            vmem_limit_bytes=vmem_limit,
        ),
    )(perm, x_r)
    return out.reshape(N, C, H, W)


def channel_permute(x, perm, *, force_pallas=False):
    """NCHW channel gather: returns x[:, perm, :, :].

    Sub-MB tensors dispatch to plain XLA indexing (kernel-launch fixed costs
    dominate there); larger tensors (or force_pallas=True) use the Pallas path.
    """
    perm = perm.astype(jnp.int32)
    if not force_pallas and x.size * jnp.dtype(x.dtype).itemsize < _SMALL_BYTES:
        return x[:, perm, :, :]
    return _channel_permute_pallas(x, perm)


def inverse_permutation(perm):
    """Static inverse (mirrors the module's `inverse_permutation` buffer).

    Compute this once outside the hot path, not per reverse() call.
    """
    return jnp.argsort(perm).astype(jnp.int32)


def channel_permute_reverse(x, inv_perm, *, force_pallas=False):
    """Inverse of channel_permute; expects a *precomputed* inverse permutation."""
    return channel_permute(x, inv_perm, force_pallas=force_pallas)


if __name__ == "__main__":
    key = jax.random.PRNGKey(0)
    k_perm, k_x = jax.random.split(key)

    N, C, H, W = 2, 4, 16, 16

    # Deterministic random permutation (stands in for the torch.randperm buffer).
    perm = jax.random.permutation(k_perm, C).astype(jnp.int32)
    inv_perm = inverse_permutation(perm)  # precomputed once, like the module buffer
    x = jax.random.normal(k_x, (N, C, H, W), dtype=jnp.float32)

    # Force the Pallas path at this small demo shape so the kernel is exercised
    # (the public wrapper would otherwise route sub-MB inputs to XLA indexing).
    out = jax.block_until_ready(channel_permute(x, perm, force_pallas=True))

    # Correctness check against plain JAX indexing (same as x[:, perm, :, :]).
    ref = x[:, perm, :, :]
    assert jnp.allclose(out, ref), "forward mismatch"

    # reverse(forward(x)) == x via the Pallas path.
    back = jax.block_until_ready(
        channel_permute_reverse(out, inv_perm, force_pallas=True))
    assert jnp.allclose(back, x), "reverse mismatch"

    # Auto-dispatch (small -> XLA gather) also matches.
    out_auto = jax.block_until_ready(channel_permute(x, perm))
    assert jnp.allclose(out_auto, ref), "auto-dispatch mismatch"

    print("KERNEL_OK")
</pallas_src>

<mosaic_0001>
module attributes {stable_mosaic.version = 11 : i64} {
  func.func @_copy_kernel(%arg0: i32, %arg1: i32, %arg2: i32, %arg3: memref<4xi32, #tpu.memory_space<smem>>, %arg4: memref<2x1x2x128xf32, #tpu.memory_space<vmem>>, %arg5: memref<2x1x2x128xf32, #tpu.memory_space<vmem>>) attributes {dimension_semantics = [#tpu.dimension_semantics<parallel>, #tpu.dimension_semantics<parallel>, #tpu.dimension_semantics<parallel>], iteration_bounds = array<i64: 4, 1, 1>, scalar_prefetch = 1 : i64, scratch_operands = 0 : i64, tpu.core_type = #tpu.core_type<tc>, window_params = [{transform_indices = @transform_0, window_bounds = array<i64: 2, 1, 2, 128>}, {transform_indices = @transform_1, window_bounds = array<i64: 2, 1, 2, 128>}]} {
    %c0 = arith.constant 0 : index
    %c0_0 = arith.constant 0 : index
    %c0_1 = arith.constant 0 : index
    %c0_2 = arith.constant 0 : index
    %0 = vector.load %arg4[%c0, %c0_0, %c0_1, %c0_2] : memref<2x1x2x128xf32, #tpu.memory_space<vmem>>, vector<2x1x2x128xf32>
    %c0_3 = arith.constant 0 : index
    %c0_4 = arith.constant 0 : index
    %c0_5 = arith.constant 0 : index
    %c0_6 = arith.constant 0 : index
    %1 = vector.load %arg5[%c0_3, %c0_4, %c0_5, %c0_6] : memref<2x1x2x128xf32, #tpu.memory_space<vmem>>, vector<2x1x2x128xf32>
    tpu.vector_store %arg5[%c0_3, %c0_4, %c0_5, %c0_6], %0 {strides = array<i32>} : memref<2x1x2x128xf32, #tpu.memory_space<vmem>>, vector<2x1x2x128xf32>,
    return
  }
  func.func @transform_0(%arg0: i32, %arg1: i32, %arg2: i32, %arg3: memref<4xi32, #tpu.memory_space<smem>>) -> (i32, i32, i32, i32) {
    %0 = arith.index_cast %arg0 : i32 to index
    %1 = memref.load %arg3[%0] : memref<4xi32, #tpu.memory_space<smem>>
    %c0_i32 = arith.constant 0 : i32
    %c0_i32_0 = arith.constant 0 : i32
    return %arg1, %1, %arg2, %c0_i32 : i32, i32, i32, i32
  }
  func.func @transform_1(%arg0: i32, %arg1: i32, %arg2: i32, %arg3: memref<4xi32, #tpu.memory_space<smem>>) -> (i32, i32, i32, i32) {
    %c0_i32 = arith.constant 0 : i32
    %c0_i32_0 = arith.constant 0 : i32
    return %arg1, %arg0, %arg2, %c0_i32 : i32, i32, i32, i32
  }
}

</mosaic_0001>

<bundles_post_ra>
// kernel: tpu_custom_call.1
= control target key start
LH: loop header
LB: loop body
LE: loop exit
PB: predicated region body
PF: predicated region fallthrough
CT: control target
= control target key end

     0   :  { %s541_s9 = smov [#allocation3]   ;;  %s769_s0 = inlined_call_operand.hbm [shape: s32[4], index: 0, kind: input, shape index: {}]   ;;  %s770_s1 = inlined_call_operand.hbm [shape: f32[2,4,2,128], index: 1, kind: input, shape index: {}]   ;;  %s771_s2 = inlined_call_operand.hbm [shape: f32[2,4,2,128], index: 2, kind: output, shape index: {}]  }
   0x1   :  { %8 = dma.hbm_to_smem %s769_s0, 16, %s541_s9, [#allocation2] }
   0x2   :  { %495 = dma.done.wait [#allocation2], 16 }
   0x3   :  { %496 = vsyncadd [#allocation2], 4294967280 }
   0x4   :  { %10 = sfence }
   0x5   :  { %11 = vsyncpa [#allocation5], 0 }
   0x6   :  { %13 = vsyncpa [#allocation5 + $0x1], 0 }
   0x7   :  { %14 = vsyncpa [#allocation6], 0 }
   0x8   :  { %16 = vsyncpa [#allocation6 + $0x1], 0  ;;  %s568_s12 = smov 0   ;;  %s570_s13 = smov 0  }
   0x9   :  { %s572_s14 = smov 0   ;;  %s574_s15 = smov 0  }
   0xa   :  { %s576_s16 = smov 0   ;;  %s578_s17 = smov 0  }
   0xb   :  { %s580_s0 = smov 0   ;;  %s582_s18 = smov 0  }
   0xc   :  { %s584_s19 = smov 0  }
   0xd LB: > { %s287_s20 = sadd.s32 4294967295, %s539_s19   ;;  %s288_s21 = sadd.s32 4294967294, %s539_s19   ;;  %s539_s19 = sphi %s584_s19, %s22_s19   ;;  %s535_s18 = sphi %s582_s18, %s791_s18   ;;  %s531_s0 = sphi %s580_s0, %s790_s0   ;;  %s527_s17 = sphi %s578_s17, %s789_s17   ;;  %s523_s16 = sphi %s576_s16, %s788_s16   ;;  %s519_s15 = sphi %s574_s15, %s787_s15   ;;  %s515_s14 = sphi %s572_s14, %s786_s14   ;;  %s511_s13 = sphi %s570_s13, %s785_s13   ;;  %s507_s12 = sphi %s568_s12, %s784_s12  }
   0xe   : > { %s41_s22 = sadd.s32 1, %s535_s18  ;;  %s45_s23 = sld [smem:[#allocation3 + %s535_s18]] }
   0xf   : > { %p43_p0 = scmp.ge.s32.totalorder %s41_s22, 4  ;;  %s54_s24 = sadd.s32 1, %s527_s17 }
  0x10   : > { %p61_p1 = scmp.ne.s32.totalorder %s527_s17, %s523_s16  ;;  %p62_p2 = scmp.eq.s32.totalorder %s539_s19, 0 }
  0x11   : > { %s793_s22 = smov (%p43_p0, %s41_s22), 0  ;;  %p67_p4 = scmp.ne.s32.totalorder %s523_s16, %s519_s15 }
  0x12   : > { %p621_p3 = por %p62_p2, %p61_p1  ;;  %s46_s26 = sld [smem:[#allocation3 + %s793_s22]] }
  0x13   : > { %p68_p5 = scmp.eq.s32.totalorder %s287_s20, 0  ;;  %s78_s27 = ssub.s32 %s535_s18, %s793_s22 }
  0x14   : > { %s84_s28 = sadd.s32 1, %s515_s14  ;;  %p82_p7 = scmp.eq.s32.totalorder %s78_s27, 0 }
  0x15   : > { %p630_p6 = por %p68_p5, %p67_p4  ;;  %p94_p8 = scmp.ne.s32.totalorder %s515_s14, %s511_s13 }
  0x16   : > { %p95_p9 = scmp.eq.s32.totalorder %s287_s20, 3  ;;  %p100_p11 = scmp.ne.s32.totalorder %s511_s13, %s507_s12 }
  0x17   : > { %s775_s29 = scalar_select %p630_p6, 1, 0 }
  0x18   : > { %s637_s30 = scalar_select %p82_p7, %s515_s14, %s84_s28  }
  0x19   : > { %p639_p10 = por %p95_p9, %p94_p8  ;;  %s48_s4 = ssub.s32 %s45_s23, %s46_s26 }
  0x1a   : > { %p101_p12 = scmp.eq.s32.totalorder %s288_s21, 3  ;;  %p52_p13 = scmp.eq.s32.totalorder %s48_s4, 0 }
  0x1b   : > { %s776_s3 = scalar_select %p639_p10, 1, 0 }
  0x1c   : > { %p645_p0 = por %p101_p12, %p100_p11  ;;  %p316_p1 = scmp.lt.s32.totalorder %s539_s19, 4 }
  0x1d   : > { %s651_s6 = scalar_select %p52_p13, %s527_s17, %s54_s24  }
  0x1e   : > { %s777_s5 = scalar_select %p645_p0, 1, 0 }
  0x1f   : > { %s121_s7 = sand.u32 1, %s527_s17   ;;  %p656_p2 = pnand %p316_p1, %p621_p3 }
  0x20   : > { %s291_s9 = sshll.u32 %s121_s7, 2  ;;  %p293_p4 = scmp.ge.s32.totalorder %s539_s19, 1 }
  0x21   : > { %s300_s10 = scalar_select %p621_p3, [#allocation3], [#allocation8] }
  0x22   : > { %s301_s11 = scalar_select %p621_p3, %s535_s18, 0 }
  0x23   : > { %s795_s10 = smov (!%p316_p1, %s300_s10), [#allocation9]  ;;  %s125_s20 = scalar_lea.vmem [#allocation4], %s291_s9 }
  0x24   : > { %s797_s11 = smov (!%p316_p1, %s301_s11), 0  ;;  %s136_s21 = sshll.u32 %s125_s20, 4  ;;  %s667_s21 = int_to_ptr.vmem [resolvable:$true] %s136_s21 }
  0x25   : > { %s126_s15 = sld [smem:[%s795_s10 + %s797_s11]]  ;;  %p144_p5 = scmp.lt.s32.totalorder %s539_s19, 5 }
  0x26   : > { %s678_s28 = scalar_lea.sflag [#allocation5], %s121_s7  ;;  %p407_p8 = pneg %p656_p2 }
  0x27   : > { %p669_p7 = pnand %p293_p4, %p144_p5  ;;  %s410_s11 = scalar_lea.hbm %s770_s1, 256 }
  0x29   : > { %s779_s23 = scalar_select %p669_p7, 1, 0 }
  0x2b   : > { %s292_s24 = sshll.u32 %s126_s15, 5 }
  0x2c   : > { %s676_s25 = scalar_lea.hbm %s770_s1, %s292_s24 }
  0x2d   : > { %s405_s4 = scalar_lea.hbm %s676_s25, 64  ;;  %p411_p12 = scmp.lt.s32.totalorder %s676_s25, %s770_s1 }
  0x2e   : > { %p406_p3 = scmp.ne.s32.totalorder %s676_s25, %s405_s4  ;;  %p412_p13 = scmp.lt.s32.totalorder %s410_s11, %s405_s4 }
  0x30   : > { %p408_p9 = pnand %p407_p8, %p406_p3  ;;  %p413_p1 = por %p412_p13, %p411_p12 }
  0x32   : > { %p409_p11 = pneg %p408_p9 }
  0x34   : > { %p414_p4 = pnand %p413_p1, %p409_p11 }
  0x36   : > { %417 = shalt.err (!%p414_p4)
}
  0x37   : > { %s418_s7 = scalar_lea.vmem %s667_s21, 64  ;;  %s542_s24 = smov [#allocation4]  }
  0x38   : > { %p419_p5 = scmp.ne.s32.totalorder %s667_s21, %s418_s7  ;;  %s423_s26 = sshll.u32 %s542_s24, 4  ;;  %s424_s26 = int_to_ptr.vmem [resolvable:$false] %s423_s26 }
  0x39   : > { %s425_s27 = scalar_lea.vmem %s424_s26, 128  ;;  %p426_p9 = scmp.lt.s32.totalorder %s667_s21, %s424_s26 }
  0x3a   : > { %p421_p0 = pnand %p419_p5, %p407_p8  ;;  %p427_p10 = scmp.lt.s32.totalorder %s425_s27, %s418_s7 }
  0x3c   : > { %p422_p3 = pneg %p421_p0  ;;  %p428_p6 = por %p427_p10, %p426_p9 }
  0x3e   : > { %p429_p7 = pnand %p428_p6, %p422_p3 }
  0x40   : > { %432 = shalt.err (!%p429_p7)
}
  0x41   : > { %s543_s4 = smov 128   ;;  %s544_s9 = smov 32  }
  0x42   : > { %s545_s10 = smov 2   ;;  %p780_p0 = scmp.ne.s32.totalorder %s779_s23, 0 }
  0x43   : > { %311 = dma.hbm_to_vmem [thread:$0]  (!%p656_p2), %s676_s25, 64, %s667_s21, %s678_s28, %s543_s4, %s544_s9, %s545_s10  }
  0x44   : > { %148 = sbr.rel (%p780_p0) target bundleno = 101 (0x65), region = 24  ;;  %s150_s11 = sand.u32 (!%p780_p0), 1, %s523_s16  }
  0x45   : > { %s294_s15 = sshll.u32 (!%p780_p0), %s150_s11, 2  ;;  %s151_s20 = scalar_lea.sflag (!%p780_p0), [#allocation5], %s150_s11 }
  0x46   : > { %s154_s7 = scalar_lea.vmem (!%p780_p0), [#allocation4], %s294_s15  ;;  %p781_p6 = scmp.ne.s32.totalorder (!%p780_p0), %s775_s29, 0 }
  0x49   : > { %498 = dma.done.wait (%p781_p6), %s151_s20, 64  }
  0x4a   : > { %500 = vsyncadd (%p781_p6), %s151_s20, 4294967232  ;;  %s170_s24 = sand.u32 1, %s511_s13   ;;  %s297_s21 = sshll.u32 %s531_s0, 5  ;;  %v176_v0 = vld [vmem:[%s154_s7] sm:$0xf]  }
  0x4b   : > { %s295_s8 = sshll.u32 %s170_s24, 2  ;;  %s711_s27 = scalar_lea.hbm %s771_s2, %s297_s21 }
  0x4c   : > { %s172_s25 = scalar_lea.vmem [#allocation7], %s295_s8  ;;  %s715_s29 = scalar_lea.sflag [#allocation6], %s170_s24 }
  0x4d   : > { %s197_s23 = sshll.u32 %s172_s25, 4  ;;  %178 = vst [vmem:[%s172_s25] sm:$0xf] %v176_v0   ;;  %p782_p2 = scmp.ne.s32.totalorder %s776_s3, 0  ;;  %s713_s23 = int_to_ptr.vmem [resolvable:$true] %s197_s23 }
  0x4e   : > { %s433_s4 = scalar_lea.vmem %s713_s23, 64  ;;  %s546_s0 = smov [#allocation7]  }
  0x4f   : > { %p434_p10 = scmp.ne.s32.totalorder %s713_s23, %s433_s4  ;;  %s437_s9 = sshll.u32 %s546_s0, 4  ;;  %s438_s9 = int_to_ptr.vmem [resolvable:$false] %s437_s9 }
  0x50   : > { %s439_s10 = scalar_lea.vmem %s438_s9, 128  ;;  %p440_p11 = scmp.lt.s32.totalorder %s713_s23, %s438_s9 }
  0x51   : > { %p435_p7 = pnand %p434_p10, %p782_p2  ;;  %p441_p12 = scmp.lt.s32.totalorder %s439_s10, %s433_s4 }
  0x53   : > { %p436_p8 = pneg %p435_p7  ;;  %p442_p13 = por %p441_p12, %p440_p11 }
  0x55   : > { %p443_p1 = pnand %p442_p13, %p436_p8 }
  0x57   : > { %446 = shalt.err (!%p443_p1)
}
  0x58   : > { %s447_s11 = scalar_lea.hbm %s711_s27, 64  ;;  %s451_s7 = scalar_lea.hbm %s771_s2, 256 }
  0x59   : > { %p448_p4 = scmp.ne.s32.totalorder %s711_s27, %s447_s11  ;;  %p452_p9 = scmp.lt.s32.totalorder %s711_s27, %s771_s2 }
  0x5a   : > { %p453_p0 = scmp.lt.s32.totalorder %s451_s7, %s447_s11 }
  0x5b   : > { %p449_p5 = pnand %p448_p4, %p782_p2 }
  0x5c   : > { %p454_p6 = por %p453_p0, %p452_p9 }
  0x5d   : > { %p450_p3 = pneg %p449_p5 }
  0x5f   : > { %p455_p10 = pnand %p454_p6, %p450_p3 }
  0x61   : > { %458 = shalt.err (!%p455_p10)
}
  0x62   : > { %s547_s21 = smov 32   ;;  %s548_s25 = smov 128  }
  0x63   : > { %s549_s28 = smov 2  }
  0x64   : > { %304 = dma.vmem_to_hbm [thread:$0]  (%p782_p2), %s713_s23, 64, %s711_s27, %s715_s29, %s547_s21, %s548_s25, %s549_s28  }
  0x65 PF: > { %p317_p7 = scmp.ge.s32.totalorder %s539_s19, 2  ;;  %s212_s26 = sand.u32 1, %s507_s12  }
  0x66   : > { %p783_p8 = scmp.ne.s32.totalorder %s777_s5, 0  ;;  %s213_s4 = scalar_lea.sflag [#allocation6], %s212_s26 }
  0x68   : > { %p313_p11 = pnand %p317_p7, %p783_p8 }
  0x6a   : > { %p314_p12 = pneg %p313_p11 }
  0x6c   : > { %502 = dma.done.wait (%p314_p12), %s213_s4, 64  }
  0x6d   : > { %504 = vsyncadd (%p314_p12), %s213_s4, 4294967232  ;;  %s22_s19 = sadd.s32 1, %s539_s19   ;;  %s784_s12 = smov %s511_s13 }
  0x6e   : > { %p19_p13 = scmp.ge.s32.totalorder %s22_s19, 6   ;;  %s785_s13 = smov %s515_s14 }
  0x6f   : > { %s786_s14 = smov %s637_s30  ;;  %s787_s15 = smov %s523_s16 }
  0x70   : > { %s788_s16 = smov %s527_s17  ;;  %s789_s17 = smov %s651_s6 }
  0x71   : > { %s790_s0 = smov %s535_s18  ;;  %s791_s18 = smov %s793_s22 }
  0x72   :  { %21 = sbr.rel (!%p19_p13) target bundleno = 13 (0xd), region = 69 }
  0x77   :  { %218 = vsyncpa [#allocation5], 1 }
  0x78   :  { %220 = vsyncpa [#allocation5 + $0x1], 1 }
  0x79   :  { %221 = vsyncpa [#allocation6], 1 }
  0x7a   :  { %223 = vsyncpa [#allocation6 + $0x1], 1 }

</bundles_post_ra>
